<compile_context>
chip_gen: v5e
topology: v5e:2x2
jax: 0.10.0
libtpu: 0.0.40
codegen_flags: <defaults>
</compile_context>

<pallas_src>
import functools

import jax
import jax.numpy as jnp
from jax import lax
from jax.experimental import pallas as pl
from jax.experimental.pallas import tpu as pltpu


def _round_up(n, m):
    return ((n + m - 1) // m) * m


def _mlp_kernel(x_ref, w1_ref, b1_ref, w2_ref, b2_ref, w3_ref, b3_ref, o_ref):
    # fc1 + ReLU.  The x tile is downcast to the weight (compute) dtype here,
    # inside the kernel, so x never needs a separate HBM cast pass.  The MXU
    # accumulates in f32; bias + ReLU run in f32, then the cross-layer
    # activation is downcast so the (block_b, H1) temporary feeding fc2 is
    # compute-dtype, not f32.
    x = x_ref[...].astype(w1_ref.dtype)
    h1 = jnp.dot(x, w1_ref[...], preferred_element_type=jnp.float32)
    h1 = jnp.maximum(h1 + b1_ref[...], 0.0).astype(w2_ref.dtype)

    # fc2 + ReLU, same pattern.
    h2 = jnp.dot(h1, w2_ref[...], preferred_element_type=jnp.float32)
    h2 = jnp.maximum(h2 + b2_ref[...], 0.0).astype(w3_ref.dtype)

    # fc3 (out_features == 1): contract the (1, H2) weight row with h2 along
    # H2 so the result lands lane-major as (1, block_b) — no transpose needed
    # and the output store is lane-dense.  The M=1 MXU cost is negligible
    # next to fc1/fc2.
    logits = lax.dot_general(
        w3_ref[...], h2,
        dimension_numbers=(((1,), (1,)), ((), ())),
        preferred_element_type=jnp.float32)                 # (1, block_b)
    logits = logits + b3_ref[0]                             # SMEM scalar bias
    o_ref[...] = jax.nn.sigmoid(logits).astype(o_ref.dtype)


def _weight_spec(shape, single_buffer):
    """Resident (constant index_map) block; optionally single-buffered."""
    index_map = lambda i, _nd=len(shape): (0,) * _nd
    if single_buffer:
        return pl.BlockSpec(shape, index_map, pipeline_mode=pl.Buffered(1))
    return pl.BlockSpec(shape, index_map)


@functools.partial(
    jax.jit,
    static_argnames=("block_b", "compute_dtype", "single_buffer_weights",
                     "vmem_limit_bytes"),
)
def _three_feed_forward_impl(x, w1, b1, w2, b2, w3, b3, *, block_b,
                             compute_dtype, single_buffer_weights,
                             vmem_limit_bytes):
    B, D_in = x.shape
    H1 = w1.shape[1]
    H2 = w2.shape[1]
    out_dtype = x.dtype

    # Matmul weights in the compute dtype (a no-op if the caller pre-cast them
    # via prepare_params); biases and all element-wise math stay f32.
    w1 = w1.astype(compute_dtype)
    w2 = w2.astype(compute_dtype)
    w3 = w3.astype(compute_dtype)

    b1r = b1.astype(jnp.float32).reshape(1, H1)
    b2r = b2.astype(jnp.float32).reshape(1, H2)
    w3r = w3.reshape(1, H2)                       # fc3 weight as a lane row
    b3s = b3.astype(jnp.float32).reshape(1)       # scalar bias -> SMEM

    n_blocks = pl.cdiv(B, block_b)
    rows = n_blocks * block_b

    cdt = jnp.dtype(compute_dtype).itemsize
    cost = pl.CostEstimate(
        flops=2 * rows * (D_in * H1 + H1 * H2 + H2),
        transcendentals=rows,  # one exp per sigmoid
        bytes_accessed=(B * D_in * x.dtype.itemsize
                        + (D_in * H1 + H1 * H2 + H2) * cdt
                        + (H1 + H2 + 1) * 4
                        + rows * jnp.dtype(out_dtype).itemsize),
    )

    # TODO(synk): if D_in/H1/H2 ever grow past what fits resident in VMEM
    # (esp. v7x's 64 MiB), add a K-tiled "arbitrary" reduction grid axis with
    # a pl.when-initialized f32 accumulator instead of whole-weight blocks.
    out = pl.pallas_call(
        _mlp_kernel,
        out_shape=jax.ShapeDtypeStruct((n_blocks, 1, block_b), out_dtype),
        grid_spec=pltpu.PrefetchScalarGridSpec(
            num_scalar_prefetch=0,
            grid=(n_blocks,),
            in_specs=[
                # x tile: double-buffered by default.
                # TODO(synk): bump to pipeline_mode=pl.Buffered(3) if a
                # profile shows the x-tile DMA exposed (large D_in vs H1/H2).
                pl.BlockSpec((block_b, D_in), lambda i: (i, 0)),
                _weight_spec((D_in, H1), single_buffer_weights),       # w1
                _weight_spec((1, H1), single_buffer_weights),          # b1
                _weight_spec((H1, H2), single_buffer_weights),         # w2
                _weight_spec((1, H2), single_buffer_weights),          # b2
                _weight_spec((1, H2), single_buffer_weights),          # w3 row
                pl.BlockSpec(memory_space=pltpu.MemorySpace.SMEM),     # b3
            ],
            out_specs=pl.BlockSpec((None, 1, block_b), lambda i: (i, 0, 0)),
        ),
        compiler_params=pltpu.CompilerParams(
            # Batch axis is embarrassingly parallel; shards across both
            # TensorCores on v7x (v5e/v6e have a single TC).
            dimension_semantics=("parallel",),
            vmem_limit_bytes=vmem_limit_bytes,
        ),
        cost_estimate=cost,
    )(x, w1, b1r, w2, b2r, w3r, b3s)

    # (n_blocks, 1, block_b) lane-major rows -> (B, 1) column.  The tail rows
    # computed from the out-of-bounds part of the last x tile are dropped.
    return out.reshape(n_blocks * block_b, 1)[:B]


def _sublane_pack(dtype):
    # Sub-32-bit dtypes pack along sublanes: the second-to-last block dim of
    # the x tile must respect (8/16/32, 128) packed-tile divisibility.
    return {1: 32, 2: 16}.get(jnp.dtype(dtype).itemsize, 8)


def _default_block_b(B, pack):
    if B <= 256:
        return _round_up(B, pack)
    # >= 2 grid blocks when B permits (keeps both v7x TensorCores busy), with
    # block_b a multiple of 256 (MXU M tile on v6e/v7x; also a multiple of the
    # v5e 128 tile), capped at 512 to bound per-tile activation VMEM.
    return min(512, _round_up(-(-B // 2), 256))


@functools.lru_cache(maxsize=None)
def _vmem_capacity_bytes():
    try:
        return int(pltpu.get_tpu_info().vmem_capacity_bytes)
    except Exception:
        return 64 << 20  # conservative default: v7x per-TensorCore VMEM


def _pick_vmem_limit(block_b, d_in, h1, h2, compute_dtype, x_dtype):
    cdt = jnp.dtype(compute_dtype).itemsize
    xdt = jnp.dtype(x_dtype).itemsize
    # Worst case (double-buffered weights, i.e. the fallback path) so the same
    # limit is valid for both buffering modes.
    weights = 2 * ((d_in * h1 + h1 * h2 + h2) * cdt + (h1 + h2) * 4)
    x_tiles = 2 * block_b * d_in * xdt
    o_tiles = 2 * block_b * xdt
    acts = block_b * (h1 + h2) * (4 + cdt)
    est = weights + x_tiles + o_tiles + acts
    cap = _vmem_capacity_bytes()
    # Never below the common 32 MiB scoped default (v5e's default is 16 MiB),
    # never above ~85% of physical VMEM (headroom for Mosaic scratch).
    return int(min(cap * 0.85, max(32 << 20, int(est * 1.5) + (2 << 20))))


def three_feed_forward(x, w1, b1, w2, b2, w3, b3, *, block_b=None,
                       compute_dtype=jnp.bfloat16):
    """Fused ThreeFeedForward forward pass.

    x: [B, D_in] (kept in its own dtype; downcast per-tile inside the kernel).
    w_i: [in_i, out_i] (pre-transposed vs. PyTorch); b_i: [out_i].
    compute_dtype: MXU operand dtype (default bf16 — MXU-native on
    v5e/v6e/v7x).  Accumulation, biases, ReLU and sigmoid stay f32.
    """
    B, D_in = x.shape
    H1, H2 = w1.shape[1], w2.shape[1]

    pack = _sublane_pack(x.dtype)
    if block_b is None:
        block_b = _default_block_b(B, pack)
    assert block_b % pack == 0, (
        f"batch tile {block_b} must be a multiple of {pack} for x dtype "
        f"{jnp.dtype(x.dtype).name}")

    kwargs = dict(
        block_b=block_b,
        compute_dtype=compute_dtype,
        vmem_limit_bytes=_pick_vmem_limit(block_b, D_in, H1, H2,
                                          compute_dtype, x.dtype),
    )
    args = (x, w1, b1, w2, b2, w3, b3)
    try:
        return _three_feed_forward_impl(*args, single_buffer_weights=True,
                                        **kwargs)
    except Exception as e:
        # Only fall back if this jax/Mosaic build rejects single-buffered
        # (pl.Buffered(1)) weight blocks; anything else is a real error.
        msg = f"{type(e).__name__}: {e}".lower()
        if any(t in msg for t in ("buffered", "pipeline_mode", "pipeline mode",
                                  "buffer_count", "buffer count")):
            return _three_feed_forward_impl(*args, single_buffer_weights=False,
                                            **kwargs)
        raise


def prepare_params(params, compute_dtype=jnp.bfloat16):
    """Cast the matmul weights to the compute dtype ONCE (outside the per-call
    jit) so repeated forward calls don't re-convert them in HBM.  Biases stay
    in their original (f32) dtype."""
    w1, b1, w2, b2, w3, b3 = params
    return (w1.astype(compute_dtype), b1,
            w2.astype(compute_dtype), b2,
            w3.astype(compute_dtype), b3)


def init_params(key, input_size, hidden_size_1, hidden_size_2,
                dtype=jnp.float32):
    """torch.nn.Linear-style init (U(-1/sqrt(fan_in), +1/sqrt(fan_in))),
    with weights returned pre-transposed as [in, out]."""
    ks = jax.random.split(key, 6)

    def linear(kw, kb, fan_in, fan_out):
        bound = 1.0 / jnp.sqrt(jnp.array(fan_in, dtype=jnp.float32))
        w = jax.random.uniform(kw, (fan_in, fan_out), dtype, -bound, bound)
        b = jax.random.uniform(kb, (fan_out,), dtype, -bound, bound)
        return w, b

    w1, b1 = linear(ks[0], ks[1], input_size, hidden_size_1)
    w2, b2 = linear(ks[2], ks[3], hidden_size_1, hidden_size_2)
    w3, b3 = linear(ks[4], ks[5], hidden_size_2, 1)
    return w1, b1, w2, b2, w3, b3


def reference_forward(x, w1, b1, w2, b2, w3, b3):
    h = jnp.maximum(x @ w1 + b1, 0.0)
    h = jnp.maximum(h @ w2 + b2, 0.0)
    return jax.nn.sigmoid(h @ w3 + b3)


if __name__ == "__main__":
    key = jax.random.PRNGKey(0)
    k_x, k_p = jax.random.split(key)

    # Small shapes consistent with ThreeFeedForward(input_size, h1, h2).
    B, input_size, hidden_1, hidden_2 = 64, 32, 64, 32
    x = jax.random.normal(k_x, (B, input_size), dtype=jnp.float32)
    params = init_params(k_p, input_size, hidden_1, hidden_2)
    ref = reference_forward(x, *params)

    # 1) Default path: bf16 MXU operands, f32 accumulation / activations.
    out = jax.block_until_ready(three_feed_forward(x, *params))
    assert out.shape == (B, 1), out.shape
    assert jnp.allclose(out, ref, atol=3e-2, rtol=3e-2), "bf16 default mismatch"

    # 2) Exact-f32 path: tight tolerance vs. the XLA reference.
    out_f32 = jax.block_until_ready(
        three_feed_forward(x, *params, compute_dtype=jnp.float32))
    assert jnp.allclose(out_f32, ref, atol=1e-5, rtol=1e-5), "f32 mismatch"

    # 3) Ragged batch + small explicit tile: exercises the pad-free boundary
    #    tile (grid = cdiv(B, block_b)) and a multi-step pipelined grid.
    B2 = 52
    x2 = jax.random.normal(k_x, (B2, input_size), dtype=jnp.float32)
    ref2 = reference_forward(x2, *params)
    out2 = jax.block_until_ready(
        three_feed_forward(x2, *params, block_b=16, compute_dtype=jnp.float32))
    assert out2.shape == (B2, 1), out2.shape
    assert jnp.allclose(out2, ref2, atol=1e-5, rtol=1e-5), "ragged mismatch"

    # 4) Inference-style pre-cast bf16 weights (no per-call weight convert).
    params_bf16 = prepare_params(params)
    out3 = jax.block_until_ready(three_feed_forward(x, *params_bf16))
    assert out3.shape == (B, 1)
    assert jnp.allclose(out3, ref, atol=3e-2, rtol=3e-2), "pre-cast mismatch"

    print("KERNEL_OK")
</pallas_src>

<mosaic_0001>
module attributes {stable_mosaic.version = 11 : i64} {
  func.func @_mlp_kernel(%arg0: i32, %arg1: memref<64x32xf32, #tpu.memory_space<vmem>>, %arg2: memref<32x64xbf16, #tpu.memory_space<vmem>>, %arg3: memref<1x64xf32, #tpu.memory_space<vmem>>, %arg4: memref<64x32xbf16, #tpu.memory_space<vmem>>, %arg5: memref<1x32xf32, #tpu.memory_space<vmem>>, %arg6: memref<1x32xbf16, #tpu.memory_space<vmem>>, %arg7: memref<1xf32, #tpu.memory_space<smem>>, %arg8: memref<1x1x64xf32, #tpu.memory_space<vmem>>) attributes {dimension_semantics = [#tpu.dimension_semantics<parallel>], iteration_bounds = array<i64: 1>, scalar_prefetch = 0 : i64, scratch_operands = 0 : i64, tpu.core_type = #tpu.core_type<tc>, window_params = [{transform_indices = @transform_0, window_bounds = array<i64: 64, 32>}, {pipeline_mode = #tpu.pipeline_mode<synchronous>, transform_indices = @transform_1, window_bounds = array<i64: 32, 64>}, {pipeline_mode = #tpu.pipeline_mode<synchronous>, transform_indices = @transform_2, window_bounds = array<i64: 1, 64>}, {pipeline_mode = #tpu.pipeline_mode<synchronous>, transform_indices = @transform_3, window_bounds = array<i64: 64, 32>}, {pipeline_mode = #tpu.pipeline_mode<synchronous>, transform_indices = @transform_4, window_bounds = array<i64: 1, 32>}, {pipeline_mode = #tpu.pipeline_mode<synchronous>, transform_indices = @transform_5, window_bounds = array<i64: 1, 32>}, {transform_indices = @transform_6, window_bounds = array<i64: 1>}, {transform_indices = @transform_7, window_bounds = array<i64: 1, 1, 64>}]} {
    %c0 = arith.constant 0 : index
    %c0_0 = arith.constant 0 : index
    %0 = vector.load %arg1[%c0, %c0_0] : memref<64x32xf32, #tpu.memory_space<vmem>>, vector<64x32xf32>
    %1 = arith.truncf %0 : vector<64x32xf32> to vector<64x32xbf16>
    %c0_1 = arith.constant 0 : index
    %c0_2 = arith.constant 0 : index
    %2 = vector.load %arg2[%c0_1, %c0_2] : memref<32x64xbf16, #tpu.memory_space<vmem>>, vector<32x64xbf16>
    %cst = arith.constant dense<0.000000e+00> : vector<64x64xf32>
    %3 = tpu.matmul %1, %2, %cst {dimension_numbers = #tpu.dot_dimension_numbers<[1], [0], [0], [1], [0, 0, 1, 1], [], []>} : vector<64x32xbf16>, vector<32x64xbf16>, vector<64x64xf32> -> vector<64x64xf32>
    %c0_3 = arith.constant 0 : index
    %c0_4 = arith.constant 0 : index
    %4 = vector.load %arg3[%c0_3, %c0_4] : memref<1x64xf32, #tpu.memory_space<vmem>>, vector<1x64xf32>
    %5 = vector.broadcast %4 : vector<1x64xf32> to vector<64x64xf32>
    %6 = arith.addf %3, %5 : vector<64x64xf32>
    %cst_5 = arith.constant 0.000000e+00 : f32
    %7 = vector.broadcast %cst_5 : f32 to vector<64x64xf32>
    %8 = arith.maximumf %6, %7 : vector<64x64xf32>
    %9 = arith.truncf %8 : vector<64x64xf32> to vector<64x64xbf16>
    %c0_6 = arith.constant 0 : index
    %c0_7 = arith.constant 0 : index
    %10 = vector.load %arg4[%c0_6, %c0_7] : memref<64x32xbf16, #tpu.memory_space<vmem>>, vector<64x32xbf16>
    %cst_8 = arith.constant dense<0.000000e+00> : vector<64x32xf32>
    %11 = tpu.matmul %9, %10, %cst_8 {dimension_numbers = #tpu.dot_dimension_numbers<[1], [0], [0], [1], [0, 0, 1, 1], [], []>} : vector<64x64xbf16>, vector<64x32xbf16>, vector<64x32xf32> -> vector<64x32xf32>
    %c0_9 = arith.constant 0 : index
    %c0_10 = arith.constant 0 : index
    %12 = vector.load %arg5[%c0_9, %c0_10] : memref<1x32xf32, #tpu.memory_space<vmem>>, vector<1x32xf32>
    %13 = vector.broadcast %12 : vector<1x32xf32> to vector<64x32xf32>
    %14 = arith.addf %11, %13 : vector<64x32xf32>
    %cst_11 = arith.constant 0.000000e+00 : f32
    %15 = vector.broadcast %cst_11 : f32 to vector<64x32xf32>
    %16 = arith.maximumf %14, %15 : vector<64x32xf32>
    %17 = arith.truncf %16 : vector<64x32xf32> to vector<64x32xbf16>
    %c0_12 = arith.constant 0 : index
    %c0_13 = arith.constant 0 : index
    %18 = vector.load %arg6[%c0_12, %c0_13] : memref<1x32xbf16, #tpu.memory_space<vmem>>, vector<1x32xbf16>
    %cst_14 = arith.constant dense<0.000000e+00> : vector<1x64xf32>
    %19 = tpu.matmul %18, %17, %cst_14 {dimension_numbers = #tpu.dot_dimension_numbers<[1], [1], [0], [0], [0, 0, 1, 0], [], []>} : vector<1x32xbf16>, vector<64x32xbf16>, vector<1x64xf32> -> vector<1x64xf32>
    %c0_15 = arith.constant 0 : index
    %20 = memref.load %arg7[%c0_15] : memref<1xf32, #tpu.memory_space<smem>>
    %21 = vector.broadcast %20 : f32 to vector<1x64xf32>
    %22 = arith.addf %19, %21 : vector<1x64xf32>
    %23 = arith.negf %22 : vector<1x64xf32>
    %24 = math.exp %23 : vector<1x64xf32>
    %cst_16 = arith.constant 1.000000e+00 : f32
    %25 = vector.broadcast %cst_16 : f32 to vector<1x64xf32>
    %26 = arith.addf %25, %24 : vector<1x64xf32>
    %27 = arith.divf %25, %26 : vector<1x64xf32>
    %c0_17 = arith.constant 0 : index
    %c0_18 = arith.constant 0 : index
    %c0_19 = arith.constant 0 : index
    %28 = vector.load %arg8[%c0_17, %c0_18, %c0_19] : memref<1x1x64xf32, #tpu.memory_space<vmem>>, vector<1x1x64xf32>
    %29 = vector.shape_cast %28 : vector<1x1x64xf32> to vector<1x64xf32>
    %30 = vector.shape_cast %27 : vector<1x64xf32> to vector<1x1x64xf32>
    tpu.vector_store %arg8[%c0_17, %c0_18, %c0_19], %30 {strides = array<i32>} : memref<1x1x64xf32, #tpu.memory_space<vmem>>, vector<1x1x64xf32>,
    return
  }
  func.func @transform_0(%arg0: i32) -> (i32, i32) {
    %c0_i32 = arith.constant 0 : i32
    %c0_i32_0 = arith.constant 0 : i32
    return %arg0, %c0_i32 : i32, i32
  }
  func.func @transform_1(%arg0: i32) -> (i32, i32) {
    %c0_i32 = arith.constant 0 : i32
    %c0_i32_0 = arith.constant 0 : i32
    %c0_i32_1 = arith.constant 0 : i32
    return %c0_i32, %c0_i32_0 : i32, i32
  }
  func.func @transform_2(%arg0: i32) -> (i32, i32) {
    %c0_i32 = arith.constant 0 : i32
    %c0_i32_0 = arith.constant 0 : i32
    %c0_i32_1 = arith.constant 0 : i32
    return %c0_i32, %c0_i32_0 : i32, i32
  }
  func.func @transform_3(%arg0: i32) -> (i32, i32) {
    %c0_i32 = arith.constant 0 : i32
    %c0_i32_0 = arith.constant 0 : i32
    %c0_i32_1 = arith.constant 0 : i32
    return %c0_i32, %c0_i32_0 : i32, i32
  }
  func.func @transform_4(%arg0: i32) -> (i32, i32) {
    %c0_i32 = arith.constant 0 : i32
    %c0_i32_0 = arith.constant 0 : i32
    %c0_i32_1 = arith.constant 0 : i32
    return %c0_i32, %c0_i32_0 : i32, i32
  }
  func.func @transform_5(%arg0: i32) -> (i32, i32) {
    %c0_i32 = arith.constant 0 : i32
    %c0_i32_0 = arith.constant 0 : i32
    %c0_i32_1 = arith.constant 0 : i32
    return %c0_i32, %c0_i32_0 : i32, i32
  }
  func.func @transform_6(%arg0: i32) -> i32 {
    %c0_i32 = arith.constant 0 : i32
    %c0_i32_0 = arith.constant 0 : i32
    return %c0_i32 : i32
  }
  func.func @transform_7(%arg0: i32) -> (i32, i32, i32) {
    %c0_i32 = arith.constant 0 : i32
    %c0_i32_0 = arith.constant 0 : i32
    %c0_i32_1 = arith.constant 0 : i32
    return %arg0, %c0_i32, %c0_i32_0 : i32, i32, i32
  }
}

</mosaic_0001>

<bundles_post_ra>
// kernel: _three_feed_forward_impl.1
= control target key start
LH: loop header
LB: loop body
LE: loop exit
PB: predicated region body
PF: predicated region fallthrough
CT: control target
= control target key end

     0   :  { %s463_s0 = inlined_call_operand.vmem [shape: f32[64,32], index: 0, kind: input, shape index: {}]   ;;  %s464_s1 = inlined_call_operand.vmem [shape: bf16[32,64], index: 1, kind: input, shape index: {}]   ;;  %s465_s2 = inlined_call_operand.vmem [shape: f32[1,64], index: 2, kind: input, shape index: {}]   ;;  %s466_s3 = inlined_call_operand.vmem [shape: bf16[64,32], index: 3, kind: input, shape index: {}]   ;;  %s467_s4 = inlined_call_operand.vmem [shape: f32[1,32], index: 4, kind: input, shape index: {}]   ;;  %s468_s5 = inlined_call_operand.vmem [shape: bf16[1,32], index: 5, kind: input, shape index: {}]   ;;  %s469_s6 = inlined_call_operand.<no memory space> [shape: f32[1], index: 6, kind: input, shape index: {}]   ;;  %s470_s7 = inlined_call_operand.hbm [shape: f32[1,1,64], index: 7, kind: output, shape index: {}]  }
   0x1   :  { %v308_v0 = vld [vmem:[%s464_s1 + $0x8] sm:$0xff]  ;;  %v307_v1 = vld [vmem:[%s464_s1] sm:$0xff] }
   0x2   :  { %80 = vmatpush.bf16.msra.mxu0 %v308_v0  ;;  %v29_v2 = vld [vmem:[%s463_s0] sm:$0xff]  ;;  %v30_v3 = vld [vmem:[%s463_s0 + $0x8] sm:$0xff]  ;;  %313 = vmatpush.bf16.msra.mxu1 %v308_v0 }
   0x3   :  { %13 = vsyncpa [#allocation4], 0  ;;  %v37_v4 = vpack.c.bf16 %v30_v3, %v29_v2  ;;  %vm61_vm0 = vcmask 261120   ;;  %v35_v5 = vld [vmem:[%s463_s0 + $0x30] sm:$0xff]  ;;  %v36_v6 = vld [vmem:[%s463_s0 + $0x38] sm:$0xff]  ;;  %vm151_vm1 = vcmask 523264  }
   0x4   :  { %v40_v7 = vpack.c.bf16 %v36_v6, %v35_v5  ;;  %v31_v8 = vld [vmem:[%s463_s0 + $0x10] sm:$0xff]  ;;  %v32_v9 = vld [vmem:[%s463_s0 + $0x18] sm:$0xff]  ;;  %v33_v11 = vld [vmem:[%s463_s0 + $0x20] sm:$0xff]  ;;  %vm255_vm5 = vcmask 516096  }
   0x5   :  { %v38_v10 = vpack.c.bf16 %v32_v9, %v31_v8  ;;  %v34_v12 = vld [vmem:[%s463_s0 + $0x28] sm:$0xff]  ;;  %v312_v14 = vld [vmem:[%s466_s3 + $0x18] sm:$0xff]  ;;  %v311_v15 = vld [vmem:[%s466_s3 + $0x10] sm:$0xff] }
   0x6   :  { %81 = vmatpush.bf16.msra.mxu0 %v307_v1  ;;  %314 = vmatpush.bf16.msra.mxu1 %v307_v1  ;;  %v39_v13 = vpack.c.bf16 %v34_v12, %v33_v11  ;;  %v310_v16 = vld [vmem:[%s466_s3 + $0x8] sm:$0xff]  ;;  %v309_v17 = vld [vmem:[%s466_s3] sm:$0xff] }
   0x7   :  { %315 = vmatpush.bf16.msra.mxu3 %v312_v14  ;;  %v320_v19 = vld [vmem:[%s465_s2] ss:$0 sm:$0xff] }
   0x8   :  { %v321_v52 = vld [vmem:[%s467_s4] ss:$0 sm:$0xff] }
   0x9   :  { %281 = vmatmul.msk.bf16.vlgmr.msra.gmra.mxu0 %vm61_vm0, %v37_v4  ;;  %284 = vmatmul.msk.bf16.vlgmr.msra.gmra.mxu1 %vm61_vm0, %v40_v7 }
   0xa   :  { %168 = vmatpush.bf16.msrb.mxu1 %v312_v14 }
   0xb   :  { %316 = vmatpush.bf16.msra.mxu3 %v311_v15 }
   0xe   :  { %169 = vmatpush.bf16.msrb.mxu1 %v311_v15 }
   0xf   :  { %317 = vmatpush.bf16.msra.mxu3 %v310_v16 }
  0x12   :  { %170 = vmatpush.bf16.msrb.mxu1 %v310_v16  ;;  %v205_v16 = vld [vmem:[%s468_s5] sm:$0x1]  ;;  %s352_s5 = smov [#allocation3]  }
  0x13   :  { %318 = vmatpush.bf16.msra.mxu3 %v309_v17  ;;  %s262_s9 = sshll.u32 %s352_s5, 4  ;;  %s263_s9 = int_to_ptr.vmem [resolvable:$true] %s262_s9 }
  0x16   :  { %171 = vmatpush.bf16.msrb.mxu1 %v309_v17  ;;  %v207_v17 = vstv %s469_s6  ;;  %s264_s6 = sshll.u32 %s470_s7, 4  ;;  %s265_s6 = int_to_ptr.hbm [resolvable:$true] %s264_s6 }
  0x19   :  { %282 = vmatmul.msk.bf16.gmra.mxu0 %vm61_vm0, %v38_v10 }
  0x29   :  { %283 = vmatmul.msk.bf16.gmra.mxu0 %vm61_vm0, %v39_v13 }
  0x86   :  { %v83_v18 = vpop.f32.mrf.mxu0  ;;  %v98_v36 = vpop.f32.mrf.mxu1 }
  0x87   :  { %v84_v20 = vadd.f32 %v320_v19, %v83_v18  ;;  %v99_v42 = vadd.f32 %v320_v19, %v98_v36 }
  0x89   :  { %v103_v23 = vmax.f32 %v84_v20, 0.0  ;;  %v109_v44 = vmax.f32 %v99_v42, 0.0 }
  0x8e   :  { %v85_v21 = vpop.f32.mrf.mxu0  ;;  %v100_v41 = vpop.f32.mrf.mxu1 }
  0x8f   :  { %v86_v22 = vadd.f32 %v320_v19, %v85_v21  ;;  %v101_v43 = vadd.f32 %v320_v19, %v100_v41 }
  0x91   :  { %v104_v24 = vmax.f32 %v86_v22, 0.0  ;;  %v110_v45 = vmax.f32 %v101_v43, 0.0 }
  0x93   :  { %v111_v25 = vpack.c.bf16 %v104_v24, %v103_v23  ;;  %v114_v46 = vpack.c.bf16 %v110_v45, %v109_v44 }
  0x95   :  { %301 = vmatmul.msk.bf16.vlgmr.msrb.gmra.mxu1 %vm151_vm1, %v111_v25 }
  0x96   :  { %v88_v26 = vpop.f32.mrf.mxu0 }
  0x97   :  { %v89_v27 = vadd.f32 %v320_v19, %v88_v26 }
  0x99   :  { %v105_v30 = vmax.f32 %v89_v27, 0.0 }
  0x9e   :  { %v90_v28 = vpop.f32.mrf.mxu0 }
  0x9f   :  { %v91_v29 = vadd.f32 %v320_v19, %v90_v28 }
  0xa1   :  { %v106_v31 = vmax.f32 %v91_v29, 0.0 }
  0xa3   :  { %v112_v32 = vpack.c.bf16 %v106_v31, %v105_v30 }
  0xa5   :  { %302 = vmatmul.msk.bf16.vlgmr.msra.gmra.mxu3 %vm151_vm1, %v112_v32 }
  0xa6   :  { %v93_v33 = vpop.f32.mrf.mxu0 }
  0xa7   :  { %v94_v34 = vadd.f32 %v320_v19, %v93_v33 }
  0xa9   :  { %v107_v38 = vmax.f32 %v94_v34, 0.0 }
  0xae   :  { %v95_v35 = vpop.f32.mrf.mxu0 }
  0xaf   :  { %v96_v37 = vadd.f32 %v320_v19, %v95_v35 }
  0xb1   :  { %v108_v39 = vmax.f32 %v96_v37, 0.0 }
  0xb3   :  { %v113_v40 = vpack.c.bf16 %v108_v39, %v107_v38 }
  0xb5   :  { %303 = vmatmul.msk.bf16.gmra.mxu3 %vm151_vm1, %v113_v40 }
  0xc5   :  { %304 = vmatmul.msk.bf16.gmra.mxu3 %vm151_vm1, %v114_v46 }
 0x112   :  { %v173_v61 = vpop.f32.mrf.mxu1 }
 0x113   :  { %v174_v10 = vadd.f32 %v321_v52, %v173_v61 }
 0x115   :  { %v193_v13 = vmax.f32 %v174_v10, 0.0 }
 0x11a   :  { %v175_v6 = vpop.f32.mrf.mxu1 }
 0x11b   :  { %v176_v8 = vadd.f32 %v321_v52, %v175_v6 }
 0x11d   :  { %v194_v11 = vmax.f32 %v176_v8, 0.0 }
 0x11f   :  { %v201_v14 = vpack.c.bf16 %v194_v11, %v193_v13 }
 0x121   :  { %v212_v15 = vsel %vm61_vm0, %v201_v14, 0 }
 0x128   :  { %v178_v47 = vpop.f32.mrf.mxu3 }
 0x129   :  { %v179_v3 = vadd.f32 %v321_v52, %v178_v47 }
 0x12b   :  { %v195_v7 = vmax.f32 %v179_v3, 0.0 }
 0x130   :  { %v180_v48 = vpop.f32.mrf.mxu3 }
 0x131   :  { %v181_v1 = vadd.f32 %v321_v52, %v180_v48 }
 0x133   :  { %v196_v4 = vmax.f32 %v181_v1, 0.0 }
 0x135   :  { %v202_v9 = vpack.c.bf16 %v196_v4, %v195_v7 }
 0x137   :  { %v215_v12 = vsel %vm61_vm0, %v202_v9, 0 }
 0x138   :  { %v183_v49 = vpop.f32.mrf.mxu3 }
 0x139   :  { %v184_v59 = vadd.f32 %v321_v52, %v183_v49 }
 0x13b   :  { %v197_v0 = vmax.f32 %v184_v59, 0.0 }
 0x140   :  { %v185_v50 = vpop.f32.mrf.mxu3 }
 0x141   :  { %v186_v56 = vadd.f32 %v321_v52, %v185_v50 }
 0x143   :  { %v198_v62 = vmax.f32 %v186_v56, 0.0 }
 0x145   :  { %v203_v2 = vpack.c.bf16 %v198_v62, %v197_v0 }
 0x147   :  { %v218_v5 = vsel %vm61_vm0, %v203_v2, 0 }
 0x148   :  { %v188_v51 = vpop.f32.mrf.mxu3 }
 0x149   :  { %v189_v53 = vadd.f32 %v321_v52, %v188_v51 }
 0x14b   :  { %v199_v57 = vmax.f32 %v189_v53, 0.0 }
 0x150   :  { %v190_v54 = vpop.f32.mrf.mxu3 }
 0x151   :  { %v191_v55 = vadd.f32 %v321_v52, %v190_v54 }
 0x153   :  { %v200_v58 = vmax.f32 %v191_v55, 0.0 }
 0x155   :  { %v204_v60 = vpack.c.bf16 %v200_v58, %v199_v57 }
 0x157   :  { %v221_v63 = vsel %vm61_vm0, %v204_v60, 0 }
 0x158   :  { %227 = vmatpush.bf16.xpose.msra.mxu2 %v221_v63 }
 0x160   :  { %228 = vmatpush.bf16.xpose.msra.mxu2 %v218_v5 }
 0x168   :  { %229 = vmatpush.bf16.xpose.msra.mxu2 %v215_v12 }
 0x170   :  { %230 = vmatpush.bf16.xpose.msra.mxu2 %v212_v15 }
 0x177   :  { %305 = vmatmul.msk.bf16.vlgmr.msra.gmra.mxu2 %vm61_vm0, %v205_v16 }
 0x1fa   :  { %v232_v18 = vpop.f32.mrf.mxu2 }
 0x1fb   :  { %v233_v19 = vadd.f32 %v232_v18, %v207_v17 }
 0x1fd   :  { %v306_v20 = vmul.f32 -1.442695, %v233_v19 }
 0x1ff   :  { %322 = vpow2.f32 %v306_v20 }
 0x202   :  { %v234_v21 = vpop.f32.mrf.mxu2 }
 0x205   :  { %v323_v22 = vpop.eup %322 }
 0x206   :  { %v239_v23 = vadd.f32 1.0, %v323_v22 }
 0x208   :  { %324 = vrcp.f32 %v239_v23  ;;  %v251_v27 = vand.u32 2147483648, %v239_v23  ;;  %v249_v29 = vand.u32 2147483647, %v239_v23  ;;  %vm245_vm3 = vweird.f32 %v239_v23 }
 0x20a   :  { %v252_v31 = vor.u32 1.1754944e-38, %v251_v27  ;;  %vm250_vm6 = vcmp.eq.f32.partialorder %v249_v29, 8.507059e+37 }
 0x20e   :  { %v325_v24 = vpop.eup %324 }
 0x20f   :  { %v241_v25 = vmul.f32 %v325_v24, %v239_v23  ;;  %vm246_vm2 = vweird.f32 %v325_v24 }
 0x210   :  { %vm247_vm4 = vmor %vm245_vm3, %vm246_vm2 }
 0x211   :  { %v242_v26 = vsub.f32 1.0, %v241_v25 }
 0x213   :  { %v243_v28 = vmul.f32 %v325_v24, %v242_v26 }
 0x215   :  { %v244_v30 = vadd.f32 %v325_v24, %v243_v28 }
 0x217   :  { %v248_v32 = vsel %vm247_vm4, %v325_v24, %v244_v30 }
 0x218   :  { %v253_v33 = vsel %vm250_vm6, %v252_v31, %v248_v32 }
 0x219   :  { %256 = vst.msk [vmem:[#allocation3] sm:$0x1] %vm255_vm5, %v253_v33 }
 0x21a   :  { %267 = dma.vmem_to_hbm [thread:$0]  %s263_s9, 16, %s265_s6, [#allocation4]  }
 0x21b   :  { %350 = dma.done.wait [#allocation4], 16  }
 0x21c   :  { %351 = vsyncadd [#allocation4], 4294967280 }
 0x21d   :  { %272 = vsyncpa [#allocation4], 1 }

</bundles_post_ra>
